<compile_context>
chip_gen: v7x
topology: tpu7x:2x2x1
jax: 0.10.0
libtpu: 0.0.40
codegen_flags: <defaults>
</compile_context>

<pallas_src>
import functools
import math

import jax
import jax.numpy as jnp
from jax import lax
from jax.experimental import pallas as pl
from jax.experimental.pallas import tpu as pltpu

_INV_SQRT2 = 1.0 / math.sqrt(2.0)


def _gelu_exact(x):
    # Matches torch.nn.functional.gelu default (exact, erf-based).
    return 0.5 * x * (1.0 + lax.erf(x * _INV_SQRT2))


def geglu_layer_kernel(x_ref, wv_ref, wg_ref, bv_ref, bg_ref, o_ref,
                       *, approximate_gelu):
    # x_ref:  (TILE_M, NIN)   activation tile for this grid step
    # wv_ref: (NIN, NOUT)     BN-folded weights, value half   (VMEM-resident)
    # wg_ref: (NIN, NOUT)     BN-folded weights, gate half    (VMEM-resident)
    # bv_ref: (1, NOUT)       BN-folded bias, value half (f32, resident)
    # bg_ref: (1, NOUT)       BN-folded bias, gate half  (f32, resident)
    # o_ref:  (TILE_M, NOUT)
    x = x_ref[...]
    if x.dtype != wv_ref.dtype:
        x = x.astype(wv_ref.dtype)

    # Two lane-tile-wide MXU matmuls with f32 accumulation (BN already folded).
    v = jnp.dot(x, wv_ref[...], preferred_element_type=jnp.float32) + bv_ref[...]
    g = jnp.dot(x, wg_ref[...], preferred_element_type=jnp.float32) + bg_ref[...]

    if approximate_gelu:
        act = jax.nn.gelu(g, approximate=True)   # tanh -> EUP slot
    else:
        act = _gelu_exact(g)                     # exact parity with torch default

    o_ref[...] = (v * act).astype(o_ref.dtype)


def _choose_tile_m(m, requested):
    """Pick a row tile: multiple of 8, >=2 grid steps when possible, and a
    divisor of m when possible (avoids a ragged last block)."""
    tile = min(requested, m)
    if m >= 16 and tile > m // 2:
        tile = m // 2                       # keep both v7x TensorCores busy
    if tile != m:
        tile = max(8, (tile // 8) * 8)      # sublane alignment
    if m % tile != 0:
        t = tile
        while t > 8 and m % t != 0:
            t -= 8
        if m % t == 0:
            tile = t
        # else: keep `tile`; Pallas clips the ragged last block (per-row op).
    return tile


def geglu_layer(x, gamma, beta, running_mean, running_var, w, b,
                *, eps=1e-5, tile_m=4096, approximate_gelu=False):
    """Inference-mode GeGLULayer: GEGLU(Linear(BatchNorm1d(x))).

    x: (M, NIN); w: (NIN, 2*NOUT) (pre-transposed for x @ W); b: (2*NOUT,)
    returns (M, NOUT) in x.dtype.
    """
    m, n_in = x.shape
    assert w.shape[0] == n_in and w.shape[1] % 2 == 0
    two_n_out = w.shape[1]
    n_out = two_n_out // 2

    # --- Fold BN (running stats) into the linear layer, in f32 -------------
    inv_std = 1.0 / jnp.sqrt(running_var.astype(jnp.float32) + eps)
    scale = gamma.astype(jnp.float32) * inv_std                       # (NIN,)
    shift = beta.astype(jnp.float32) - running_mean.astype(jnp.float32) * scale
    w_f32 = w.astype(jnp.float32)
    w_fold = scale[:, None] * w_f32                                   # (NIN, 2*NOUT)
    b_fold = shift @ w_f32 + b.astype(jnp.float32)                    # (2*NOUT,)

    w_fold = w_fold.astype(w.dtype)          # keep caller's weight precision
    w_v = w_fold[:, :n_out]
    w_g = w_fold[:, n_out:]
    b_v = b_fold[:n_out].reshape(1, n_out)   # bias stays f32 (added post-acc)
    b_g = b_fold[n_out:].reshape(1, n_out)

    # --- Row tiling ---------------------------------------------------------
    tile_m = _choose_tile_m(m, tile_m)
    grid = (pl.cdiv(m, tile_m),)

    x_isz = jnp.dtype(x.dtype).itemsize
    w_isz = jnp.dtype(w_fold.dtype).itemsize
    o_isz = jnp.dtype(x.dtype).itemsize

    # Per-step VMEM budget: double-buffered x/out tiles + resident weights +
    # f32 intermediates (v, g, gelu). Clamp to v7x physical VMEM.
    vmem_bytes = (2 * tile_m * n_in * x_isz
                  + 2 * tile_m * n_out * o_isz
                  + 2 * 2 * n_in * n_out * w_isz
                  + 2 * 2 * n_out * 4
                  + 3 * tile_m * n_out * 4)
    vmem_limit = min(max(int(vmem_bytes * 1.5) + (4 << 20), 32 << 20), 64 << 20)

    cost = pl.CostEstimate(
        flops=2 * m * n_in * two_n_out + 8 * m * n_out,
        transcendentals=m * n_out,
        bytes_accessed=(m * n_in * x_isz
                        + m * n_out * o_isz
                        + 2 * n_in * n_out * w_isz
                        + 2 * n_out * 4),
    )

    out = pl.pallas_call(
        functools.partial(geglu_layer_kernel, approximate_gelu=approximate_gelu),
        out_shape=jax.ShapeDtypeStruct((m, n_out), x.dtype),
        grid_spec=pltpu.PrefetchScalarGridSpec(
            num_scalar_prefetch=0,
            grid=grid,
            in_specs=[
                pl.BlockSpec((tile_m, n_in), lambda i: (i, 0)),   # x: tiled over M
                pl.BlockSpec((n_in, n_out), lambda i: (0, 0)),    # W_v (resident)
                pl.BlockSpec((n_in, n_out), lambda i: (0, 0)),    # W_g (resident)
                pl.BlockSpec((1, n_out), lambda i: (0, 0)),       # b_v (resident)
                pl.BlockSpec((1, n_out), lambda i: (0, 0)),       # b_g (resident)
            ],
            out_specs=pl.BlockSpec((tile_m, n_out), lambda i: (i, 0)),
        ),
        compiler_params=pltpu.CompilerParams(
            dimension_semantics=("parallel",),       # v7x: shard tiles over 2 TCs
            vmem_limit_bytes=vmem_limit,
        ),
        cost_estimate=cost,
    )(x, w_v, w_g, b_v, b_g)

    return out


def geglu_layer_ref(x, gamma, beta, running_mean, running_var, w, b, eps=1e-5):
    # Pure-JAX f32 reference, written like the PyTorch forward.
    xb = (x - running_mean) / jnp.sqrt(running_var + eps) * gamma + beta
    h = xb @ w + b
    n_out = w.shape[1] // 2
    v, g = h[:, :n_out], h[:, n_out:]
    return v * _gelu_exact(g)


def _init_linear(key, in_f, out_f):
    # torch.nn.Linear default-ish init, weight stored as (in_f, out_f) for x @ W.
    kw, kb = jax.random.split(key)
    bound = 1.0 / math.sqrt(in_f)
    w = jax.random.uniform(kw, (in_f, out_f), jnp.float32, -bound, bound)
    b = jax.random.uniform(kb, (out_f,), jnp.float32, -bound, bound)
    return w, b


if __name__ == "__main__":
    key = jax.random.PRNGKey(0)
    k_x, k_lin, k_g, k_b, k_m, k_v = jax.random.split(key, 6)

    batch = 256
    num_inputs = 32
    num_outputs = 128            # linear out = 256, GEGLU out = 128 (lane-dense)

    x = jax.random.normal(k_x, (batch, num_inputs), jnp.float32)

    # BatchNorm1d parameters / running stats (eval mode).
    gamma = jax.random.uniform(k_g, (num_inputs,), jnp.float32, 0.5, 1.5)
    beta = 0.1 * jax.random.normal(k_b, (num_inputs,), jnp.float32)
    running_mean = 0.1 * jax.random.normal(k_m, (num_inputs,), jnp.float32)
    running_var = jax.random.uniform(k_v, (num_inputs,), jnp.float32, 0.5, 1.5)

    # Linear(num_inputs, num_outputs * 2)
    w, b = _init_linear(k_lin, num_inputs, num_outputs * 2)

    ref = geglu_layer_ref(x, gamma, beta, running_mean, running_var, w, b)

    # f32 path (exact-parity check; BN fold is done in f32, matmul acc in f32).
    out = geglu_layer(x, gamma, beta, running_mean, running_var, w, b)
    out = jax.block_until_ready(out)
    assert out.shape == (batch, num_outputs)
    assert jnp.allclose(out, ref, atol=1e-4, rtol=1e-4), "f32 mismatch vs reference"

    # bf16 fast path (HBM-BW-bound workload: half the activation/weight bytes).
    out_bf16 = geglu_layer(x.astype(jnp.bfloat16), gamma, beta, running_mean,
                           running_var, w.astype(jnp.bfloat16), b)
    out_bf16 = jax.block_until_ready(out_bf16)
    assert out_bf16.dtype == jnp.bfloat16
    assert jnp.allclose(out_bf16.astype(jnp.float32), ref, atol=5e-2, rtol=5e-2), \
        "bf16 mismatch vs reference"

    print("KERNEL_OK")
</pallas_src>

<mosaic_0001>
module attributes {stable_mosaic.version = 11 : i64} {
  func.func @geglu_layer_kernel(%arg0: i32, %arg1: memref<128x32xf32, #tpu.memory_space<vmem>>, %arg2: memref<32x128xf32, #tpu.memory_space<vmem>>, %arg3: memref<32x128xf32, #tpu.memory_space<vmem>>, %arg4: memref<1x128xf32, #tpu.memory_space<vmem>>, %arg5: memref<1x128xf32, #tpu.memory_space<vmem>>, %arg6: memref<128x128xf32, #tpu.memory_space<vmem>>) attributes {dimension_semantics = [#tpu.dimension_semantics<parallel>], iteration_bounds = array<i64: 2>, scalar_prefetch = 0 : i64, scratch_operands = 0 : i64, tpu.core_type = #tpu.core_type<tc>, window_params = [{transform_indices = @transform_0, window_bounds = array<i64: 128, 32>}, {pipeline_mode = #tpu.pipeline_mode<synchronous>, transform_indices = @transform_1, window_bounds = array<i64: 32, 128>}, {pipeline_mode = #tpu.pipeline_mode<synchronous>, transform_indices = @transform_2, window_bounds = array<i64: 32, 128>}, {pipeline_mode = #tpu.pipeline_mode<synchronous>, transform_indices = @transform_3, window_bounds = array<i64: 1, 128>}, {pipeline_mode = #tpu.pipeline_mode<synchronous>, transform_indices = @transform_4, window_bounds = array<i64: 1, 128>}, {transform_indices = @transform_5, window_bounds = array<i64: 128, 128>}]} {
    %c0 = arith.constant 0 : index
    %c0_0 = arith.constant 0 : index
    %0 = vector.load %arg1[%c0, %c0_0] : memref<128x32xf32, #tpu.memory_space<vmem>>, vector<128x32xf32>
    %c0_1 = arith.constant 0 : index
    %c0_2 = arith.constant 0 : index
    %1 = vector.load %arg2[%c0_1, %c0_2] : memref<32x128xf32, #tpu.memory_space<vmem>>, vector<32x128xf32>
    %cst = arith.constant dense<0.000000e+00> : vector<128x128xf32>
    %2 = tpu.matmul %0, %1, %cst {dimension_numbers = #tpu.dot_dimension_numbers<[1], [0], [0], [1], [0, 0, 1, 1], [], []>} : vector<128x32xf32>, vector<32x128xf32>, vector<128x128xf32> -> vector<128x128xf32>
    %c0_3 = arith.constant 0 : index
    %c0_4 = arith.constant 0 : index
    %3 = vector.load %arg4[%c0_3, %c0_4] : memref<1x128xf32, #tpu.memory_space<vmem>>, vector<1x128xf32>
    %4 = vector.broadcast %3 : vector<1x128xf32> to vector<128x128xf32>
    %5 = arith.addf %2, %4 : vector<128x128xf32>
    %c0_5 = arith.constant 0 : index
    %c0_6 = arith.constant 0 : index
    %6 = vector.load %arg3[%c0_5, %c0_6] : memref<32x128xf32, #tpu.memory_space<vmem>>, vector<32x128xf32>
    %cst_7 = arith.constant dense<0.000000e+00> : vector<128x128xf32>
    %7 = tpu.matmul %0, %6, %cst_7 {dimension_numbers = #tpu.dot_dimension_numbers<[1], [0], [0], [1], [0, 0, 1, 1], [], []>} : vector<128x32xf32>, vector<32x128xf32>, vector<128x128xf32> -> vector<128x128xf32>
    %c0_8 = arith.constant 0 : index
    %c0_9 = arith.constant 0 : index
    %8 = vector.load %arg5[%c0_8, %c0_9] : memref<1x128xf32, #tpu.memory_space<vmem>>, vector<1x128xf32>
    %9 = vector.broadcast %8 : vector<1x128xf32> to vector<128x128xf32>
    %10 = arith.addf %7, %9 : vector<128x128xf32>
    %cst_10 = arith.constant 5.000000e-01 : f32
    %11 = vector.broadcast %cst_10 : f32 to vector<128x128xf32>
    %12 = arith.mulf %11, %10 : vector<128x128xf32>
    %cst_11 = arith.constant 0.707106769 : f32
    %13 = vector.broadcast %cst_11 : f32 to vector<128x128xf32>
    %14 = arith.mulf %10, %13 : vector<128x128xf32>
    %15 = math.erf %14 : vector<128x128xf32>
    %cst_12 = arith.constant 1.000000e+00 : f32
    %16 = vector.broadcast %cst_12 : f32 to vector<128x128xf32>
    %17 = arith.addf %16, %15 : vector<128x128xf32>
    %18 = arith.mulf %12, %17 : vector<128x128xf32>
    %19 = arith.mulf %5, %18 : vector<128x128xf32>
    %c0_13 = arith.constant 0 : index
    %c0_14 = arith.constant 0 : index
    %20 = vector.load %arg6[%c0_13, %c0_14] : memref<128x128xf32, #tpu.memory_space<vmem>>, vector<128x128xf32>
    tpu.vector_store %arg6[%c0_13, %c0_14], %19 {strides = array<i32>} : memref<128x128xf32, #tpu.memory_space<vmem>>, vector<128x128xf32>,
    return
  }
  func.func @transform_0(%arg0: i32) -> (i32, i32) {
    %c0_i32 = arith.constant 0 : i32
    %c0_i32_0 = arith.constant 0 : i32
    return %arg0, %c0_i32 : i32, i32
  }
  func.func @transform_1(%arg0: i32) -> (i32, i32) {
    %c0_i32 = arith.constant 0 : i32
    %c0_i32_0 = arith.constant 0 : i32
    %c0_i32_1 = arith.constant 0 : i32
    return %c0_i32, %c0_i32_0 : i32, i32
  }
  func.func @transform_2(%arg0: i32) -> (i32, i32) {
    %c0_i32 = arith.constant 0 : i32
    %c0_i32_0 = arith.constant 0 : i32
    %c0_i32_1 = arith.constant 0 : i32
    return %c0_i32, %c0_i32_0 : i32, i32
  }
  func.func @transform_3(%arg0: i32) -> (i32, i32) {
    %c0_i32 = arith.constant 0 : i32
    %c0_i32_0 = arith.constant 0 : i32
    %c0_i32_1 = arith.constant 0 : i32
    return %c0_i32, %c0_i32_0 : i32, i32
  }
  func.func @transform_4(%arg0: i32) -> (i32, i32) {
    %c0_i32 = arith.constant 0 : i32
    %c0_i32_0 = arith.constant 0 : i32
    %c0_i32_1 = arith.constant 0 : i32
    return %c0_i32, %c0_i32_0 : i32, i32
  }
  func.func @transform_5(%arg0: i32) -> (i32, i32) {
    %c0_i32 = arith.constant 0 : i32
    %c0_i32_0 = arith.constant 0 : i32
    return %arg0, %c0_i32 : i32, i32
  }
}

</mosaic_0001>

<bundles_post_ra>
// kernel: tpu_custom_call.1
= control target key start
LH: loop header
LB: loop body
LE: loop exit
PB: predicated region body
PF: predicated region fallthrough
CT: control target
= control target key end

     0   :  { %10 = vsyncpa [#allocation3], 0  ;;  %s1439_s0 = inlined_call_operand.vmem [shape: f32[256,32], index: 0, kind: input, shape index: {}]   ;;  %s1440_s1 = inlined_call_operand.vmem [shape: f32[32,128], index: 1, kind: input, shape index: {}]   ;;  %s1441_s2 = inlined_call_operand.vmem [shape: f32[32,128], index: 2, kind: input, shape index: {}]   ;;  %s1442_s3 = inlined_call_operand.vmem [shape: f32[1,128], index: 3, kind: input, shape index: {}]   ;;  %s1443_s4 = inlined_call_operand.vmem [shape: f32[1,128], index: 4, kind: input, shape index: {}]   ;;  %s1444_s5 = inlined_call_operand.hbm [shape: f32[256,128], index: 5, kind: output, shape index: {}]  }
   0x1   :  { %12 = vsyncpa [#allocation3 + $0x1], 0  ;;  %s1128_s18 = smov 0   ;;  %s1130_s19 = smov 0  }
   0x2   :  { %s1132_s20 = smov 0   ;;  %s1134_s21 = smov 0  }
   0x3 LB: > { %s1149_s22 = sadd.s32 4294967295, %s1093_s21   ;;  %s791_s23 = sadd.s32 4294967294, %s1093_s21   ;;  %s1093_s21 = sphi %s1134_s21, %s1450_s21   ;;  %s1089_s20 = sphi %s1132_s20, %s1449_s20   ;;  %s1085_s19 = sphi %s1130_s19, %s1448_s19   ;;  %s1081_s18 = sphi %s1128_s18, %s1447_s18  }
   0x4   : > { %s1153_s24 = sadd.s32 1, %s1093_s21   ;;  %s135_s25 = sadd.s32 1, %s1089_s20 }
   0x5   : > { %s132_s26 = ssub.s32 %s1093_s21, %s1153_s24  ;;  %p145_p0 = scmp.ne.s32.totalorder %s1089_s20, %s1085_s19 }
   0x6   : > { %p133_p1 = scmp.eq.s32.totalorder %s132_s26, 0  ;;  %p146_p2 = scmp.eq.s32.totalorder %s1149_s22, 1 }
   0x7   : > { %p151_p3 = scmp.ne.s32.totalorder %s1085_s19, %s1081_s18  ;;  %p152_p4 = scmp.eq.s32.totalorder %s791_s23, 1 }
   0x8   : > { %s1164_s27 = scalar_select %p133_p1, %s1089_s20, %s135_s25  }
   0x9   : > { %p1166_p5 = por %p146_p2, %p145_p0  ;;  %p1170_p6 = por %p152_p4, %p151_p3 }
   0xa   : > { %p794_p7 = scmp.ge.s32.totalorder %s1093_s21, 1  ;;  %p191_p8 = scmp.lt.s32.totalorder %s1093_s21, 3 }
   0xc   : > { %p192_p9 = pnand %p794_p7, %p191_p8 }
   0xd   : > { %v447_v0 = vld [vmem:[%s1441_s2] sm:$0xff] (!%p192_p9)  ;;  %v448_v1 = vld [vmem:[%s1441_s2 + $0x8] sm:$0xff] (!%p192_p9)  ;;  %v449_v2 = vld [vmem:[%s1441_s2 + $0x10] sm:$0xff] (!%p192_p9)  ;;  %s796_s11 = sshll.u32 (!%p192_p9), %s1149_s22, 4  ;;  %vm253_vm0 = vcmask (!%p192_p9), 261120   ;;  %s216_s14 = sand.u32 (!%p192_p9), 1, %s1085_s19  }
   0xe   : > { %195 = sbr.rel (%p192_p9) target bundleno = 303 (0x12f), region = 40  ;;  %v950_v3 = vpack.c.bf16 (!%p192_p9), %v448_v1, %v447_v0  ;;  %v450_v4 = vld [vmem:[%s1441_s2 + $0x18] sm:$0xff] (!%p192_p9)  ;;  %p220_p10 = scmp.lt.s32.totalorder (!%p192_p9), %s796_s11, 31  ;;  %v242_v5 = vld [vmem:[%s1440_s1] sm:$0xff] (!%p192_p9)  ;;  %v243_v6 = vld [vmem:[%s1440_s1 + $0x8] sm:$0xff] (!%p192_p9) }
   0xf   : > { %v954_v7 = vpack.c.bf16 (!%p192_p9), %v450_v4, %v449_v2  ;;  %v942_v8 = vpack.c.bf16 (!%p192_p9), %v243_v6, %v242_v5  ;;  %v244_v9 = vld [vmem:[%s1440_s1 + $0x10] sm:$0xff] (!%p192_p9)  ;;  %v245_v10 = vld [vmem:[%s1440_s1 + $0x18] sm:$0xff] (!%p192_p9)  ;;  %v1257_v28 = vld [vmem:[%s1443_s4] ss:$0 sm:$0xff] (!%p192_p9)  ;;  %s1294_s15 = sshll.u32 (!%p192_p9), %s216_s14, 7  ;;  %s837_s17 = sshll.u32 (!%p192_p9), %s1149_s22, 11 }
  0x10   : > { %951 = vmatprep.subr.bf16.mxu1 (!%p192_p9), %v950_v3  ;;  %v946_v11 = vpack.c.bf16 (!%p192_p9), %v245_v10, %v244_v9  ;;  %v1276_v54 = vld [vmem:[%s1442_s3] ss:$0 sm:$0xff] (!%p192_p9)  ;;  %s1317_s16 = scalar_lea.vmem (!%p192_p9), [#allocation2], %s1294_s15  ;;  %s1390_s30 = scalar_lea.hbm (!%p192_p9), %s1444_s5, %s837_s17 }
  0x11   : > { %953 = vmatpush3.bf16.msra.mxu1 (!%p192_p9), %v950_v3  ;;  %943 = vmatprep.subr.bf16.mxu0 (!%p192_p9), %v942_v8  ;;  %s729_s23 = sshll.u32 (!%p192_p9), %s1317_s16, 4  ;;  %s1398_s22 = scalar_lea.sflag (!%p192_p9), [#allocation3], %s216_s14  ;;  %s1392_s23 = int_to_ptr.vmem [resolvable:$true] %s729_s23 }
  0x12   : > { %955 = vmatprep.subr.bf16.mxu1 (!%p192_p9), %v954_v7  ;;  %945 = vmatpush3.bf16.msra.mxu0 (!%p192_p9), %v942_v8  ;;  %s1095_s7 = smov (!%p192_p9), [#allocation2]  }
  0x13   : > { %947 = vmatprep.subr.bf16.mxu0 (!%p192_p9), %v946_v11  ;;  %s1035_s8 = sshll.u32 (!%p192_p9), %s1095_s7, 4  ;;  %s1036_s8 = int_to_ptr.vmem [resolvable:$false] %s1035_s8 }
  0x14   : > { %p1038_p0 = scmp.lt.s32.totalorder (!%p192_p9), %s1392_s23, %s1036_s8 }
  0x15   : > { %s1452_s11 = smov (!%p220_p10, %s796_s11), 31  ;;  %957 = vmatpush3.bf16.msra.mxu1 %v954_v7 }
  0x16   : > { %s797_s6 = sshll.u32 %s1452_s11, 3  ;;  %949 = vmatpush3.bf16.msra.mxu0 %v946_v11 }
  0x17   : > { %s1204_s9 = scalar_lea.vmem %s1439_s0, %s797_s6  ;;  %s1031_s6 = scalar_lea.vmem %s1392_s23, 2048 }
  0x18   : > { %v226_v12 = vld [vmem:[%s1204_s9] sm:$0xff]  ;;  %v227_v13 = vld [vmem:[%s1204_s9 + $0x8] sm:$0xff]  ;;  %v228_v14 = vld [vmem:[%s1204_s9 + $0x10] sm:$0xff]  ;;  %p1032_p11 = scmp.ne.s32.totalorder %s1392_s23, %s1031_s6 }
  0x19   : > { %918 = vmatprep.mubr.msk.f32.mxu1 %vm253_vm0, %v226_v12  ;;  %886 = vmatprep.mubr.msk.f32.mxu0 %vm253_vm0, %v226_v12  ;;  %v229_v15 = vld [vmem:[%s1204_s9 + $0x18] sm:$0xff]  ;;  %v230_v16 = vld [vmem:[%s1204_s9 + $0x20] sm:$0xff]  ;;  %v231_v17 = vld [vmem:[%s1204_s9 + $0x28] sm:$0xff] }
  0x1a   : > { %919 = vmatmul.mubr.msk.f32.vlgmr.msra.gmra.mrb[0].mxu1 %vm253_vm0, %v227_v13  ;;  %887 = vmatmul.mubr.msk.f32.vlgmr.msra.gmra.mrb[0].mxu0 %vm253_vm0, %v227_v13  ;;  %v232_v18 = vld [vmem:[%s1204_s9 + $0x30] sm:$0xff]  ;;  %v233_v19 = vld [vmem:[%s1204_s9 + $0x38] sm:$0xff]  ;;  %v234_v20 = vld [vmem:[%s1204_s9 + $0x40] sm:$0xff]  ;;  %p1033_p12 = pnand %p1032_p11, %p1166_p5 }
  0x1b   : > { %921 = vmatprep.mubr.msk.f32.mxu1 %vm253_vm0, %v228_v14  ;;  %889 = vmatprep.mubr.msk.f32.mxu0 %vm253_vm0, %v228_v14  ;;  %v235_v21 = vld [vmem:[%s1204_s9 + $0x48] sm:$0xff]  ;;  %v236_v22 = vld [vmem:[%s1204_s9 + $0x50] sm:$0xff]  ;;  %v237_v23 = vld [vmem:[%s1204_s9 + $0x58] sm:$0xff] }
  0x1c   : > { %v238_v24 = vld [vmem:[%s1204_s9 + $0x60] sm:$0xff]  ;;  %v239_v25 = vld [vmem:[%s1204_s9 + $0x68] sm:$0xff]  ;;  %v240_v26 = vld [vmem:[%s1204_s9 + $0x70] sm:$0xff]  ;;  %p1034_p13 = pneg %p1033_p12 }
  0x1d   : > { %v241_v27 = vld [vmem:[%s1204_s9 + $0x78] sm:$0xff]  ;;  %s1037_s9 = scalar_lea.vmem %s1036_s8, 4096 }
  0x1e   : > { %922 = vmatmul.mubr.msk.f32.gmra.mrb[2].mxu1 %vm253_vm0, %v229_v15  ;;  %890 = vmatmul.mubr.msk.f32.gmra.mrb[2].mxu0 %vm253_vm0, %v229_v15  ;;  %p1039_p1 = scmp.lt.s32.totalorder %s1037_s9, %s1031_s6 }
  0x1f   : > { %924 = vmatprep.mubr.msk.f32.mxu1 %vm253_vm0, %v230_v16  ;;  %892 = vmatprep.mubr.msk.f32.mxu0 %vm253_vm0, %v230_v16 }
  0x20   : > { %p1040_p2 = por %p1039_p1, %p1038_p0 }
  0x22   : > { %925 = vmatmul.mubr.msk.f32.gmra.mrb[4].mxu1 %vm253_vm0, %v231_v17  ;;  %893 = vmatmul.mubr.msk.f32.gmra.mrb[4].mxu0 %vm253_vm0, %v231_v17  ;;  %p1041_p3 = pnand %p1040_p2, %p1034_p13 }
  0x23   : > { %927 = vmatprep.mubr.msk.f32.mxu1 %vm253_vm0, %v232_v18  ;;  %895 = vmatprep.mubr.msk.f32.mxu0 %vm253_vm0, %v232_v18 }
  0x26   : > { %928 = vmatmul.mubr.msk.f32.gmra.mrb[6].mxu1 %vm253_vm0, %v233_v19  ;;  %896 = vmatmul.mubr.msk.f32.gmra.mrb[6].mxu0 %vm253_vm0, %v233_v19 }
  0x27   : > { %930 = vmatprep.mubr.msk.f32.mxu1 %vm253_vm0, %v234_v20  ;;  %898 = vmatprep.mubr.msk.f32.mxu0 %vm253_vm0, %v234_v20 }
  0x2a   : > { %931 = vmatmul.mubr.msk.f32.gmra.mrb[8].mxu1 %vm253_vm0, %v235_v21  ;;  %899 = vmatmul.mubr.msk.f32.gmra.mrb[8].mxu0 %vm253_vm0, %v235_v21 }
  0x2b   : > { %933 = vmatprep.mubr.msk.f32.mxu1 %vm253_vm0, %v236_v22  ;;  %901 = vmatprep.mubr.msk.f32.mxu0 %vm253_vm0, %v236_v22 }
  0x2e   : > { %934 = vmatmul.mubr.msk.f32.gmra.mrb[10].mxu1 %vm253_vm0, %v237_v23  ;;  %902 = vmatmul.mubr.msk.f32.gmra.mrb[10].mxu0 %vm253_vm0, %v237_v23 }
  0x2f   : > { %936 = vmatprep.mubr.msk.f32.mxu1 %vm253_vm0, %v238_v24  ;;  %904 = vmatprep.mubr.msk.f32.mxu0 %vm253_vm0, %v238_v24 }
  0x32   : > { %937 = vmatmul.mubr.msk.f32.gmra.mrb[12].mxu1 %vm253_vm0, %v239_v25  ;;  %905 = vmatmul.mubr.msk.f32.gmra.mrb[12].mxu0 %vm253_vm0, %v239_v25 }
  0x33   : > { %939 = vmatprep.mubr.msk.f32.mxu1 %vm253_vm0, %v240_v26  ;;  %907 = vmatprep.mubr.msk.f32.mxu0 %vm253_vm0, %v240_v26 }
  0x36   : > { %940 = vmatmul.mubr.msk.f32.gmra.mrb[14].mxu1 %vm253_vm0, %v241_v27  ;;  %908 = vmatmul.mubr.msk.f32.gmra.mrb[14].mxu0 %vm253_vm0, %v241_v27 }
  0xed   : > { %v920_v29 = vpop.f32.mrb[0].mxu1  ;;  %v888_v32 = vpop.f32.mrb[0].mxu0 }
  0xee   : > { %v530_v30 = vadd.f32 %v920_v29, %v1257_v28  ;;  %v524_v31 = vpop.f32.mrb[1].mxu1  ;;  %v368_v34 = vpop.f32.mrb[1].mxu0  ;;  %v374_v62 = vadd.f32 %v888_v32, %v1276_v54 }
  0xef   : > { %v525_v33 = vadd.f32 %v1257_v28, %v524_v31  ;;  %v369_v4 = vadd.f32 %v1276_v54, %v368_v34 }
  0xf0   : > { %v620_v35 = vmul.f32 0.70710677, %v530_v30  ;;  %v604_v0 = vmul.f32 0.5, %v530_v30 }
  0xf1   : > { %v619_v36 = vmul.f32 0.70710677, %v525_v33  ;;  %v923_v37 = vpop.f32.mrb[2].mxu1  ;;  %v891_v40 = vpop.f32.mrb[2].mxu0  ;;  %v603_v5 = vmul.f32 0.5, %v525_v33 }
  0xf2   : > { %999 = verf.f32 %v620_v35  ;;  %v540_v38 = vadd.f32 %v923_v37, %v1257_v28  ;;  %v534_v39 = vpop.f32.mrb[3].mxu1  ;;  %v378_v42 = vpop.f32.mrb[3].mxu0  ;;  %v384_v12 = vadd.f32 %v891_v40, %v1276_v54 }
  0xf3   : > { %1001 = verf.f32 %v619_v36  ;;  %v535_v41 = vadd.f32 %v1257_v28, %v534_v39  ;;  %v379_v18 = vadd.f32 %v1276_v54, %v378_v42 }
  0xf4   : > { %v622_v43 = vmul.f32 0.70710677, %v540_v38  ;;  %v606_v15 = vmul.f32 0.5, %v540_v38 }
  0xf5   : > { %v621_v44 = vmul.f32 0.70710677, %v535_v41  ;;  %v926_v45 = vpop.f32.mrb[4].mxu1  ;;  %v894_v48 = vpop.f32.mrb[4].mxu0  ;;  %v605_v21 = vmul.f32 0.5, %v535_v41 }
  0xf6   : > { %1003 = verf.f32 %v622_v43  ;;  %v1264_v46 = vadd.f32 %v926_v45, %v1257_v28  ;;  %v544_v47 = vpop.f32.mrb[5].mxu1  ;;  %v1269_v50 = vpop.f32.mrb[5].mxu0  ;;  %v394_v33 = vadd.f32 %v894_v48, %v1276_v54 }
  0xf7   : > { %1005 = verf.f32 %v621_v44  ;;  %v1267_v49 = vadd.f32 %v1257_v28, %v544_v47  ;;  %v389_v39 = vadd.f32 %v1276_v54, %v1269_v50 }
  0xf8   : > { %v624_v51 = vmul.f32 0.70710677, %v1264_v46  ;;  %v608_v36 = vmul.f32 0.5, %v1264_v46 }
  0xf9   : > { %v623_v52 = vmul.f32 0.70710677, %v1267_v49  ;;  %v929_v53 = vpop.f32.mrb[6].mxu1  ;;  %v1282_v57 = vpop.f32.mrb[6].mxu0  ;;  %v607_v42 = vmul.f32 0.5, %v1267_v49 }
  0xfa   : > { %1007 = verf.f32 %v624_v51  ;;  %v1279_v55 = vadd.f32 %v929_v53, %v1257_v28  ;;  %v554_v56 = vpop.f32.mrb[7].mxu1  ;;  %v1287_v59 = vpop.f32.mrb[7].mxu0  ;;  %v404_v49 = vadd.f32 %v1282_v57, %v1276_v54 }
  0xfb   : > { %1009 = verf.f32 %v623_v52  ;;  %v1285_v58 = vadd.f32 %v1257_v28, %v554_v56 }
  0xfc   : > { %v1000_v60 = vpop.eup %999  ;;  %v626_v61 = vmul.f32 0.70710677, %v1279_v55 }
  0xfd   : > { %v1002_v63 = vpop.eup %1001  ;;  %v652_v1 = vadd.f32 1.0, %v1000_v60  ;;  %v625_v2 = vmul.f32 0.70710677, %v1285_v58  ;;  %v932_v3 = vpop.f32.mrb[8].mxu1 }
  0xfe   : > { %v651_v6 = vadd.f32 1.0, %v1002_v63  ;;  %1011 = verf.f32 %v626_v61  ;;  %v1298_v7 = vadd.f32 %v932_v3, %v1257_v28  ;;  %v564_v8 = vpop.f32.mrb[9].mxu1  ;;  %v1300_v9 = vpop.f32.mrb[8].mxu0  ;;  %v610_v61 = vmul.f32 0.5, %v1279_v55 }
  0xff   : > { %1013 = verf.f32 %v625_v2  ;;  %v668_v10 = vmul.f32 %v652_v1, %v604_v0  ;;  %v1303_v11 = vadd.f32 %v1257_v28, %v564_v8  ;;  %v1306_v13 = vpop.f32.mrb[9].mxu0  ;;  %v399_v0 = vadd.f32 %v1276_v54, %v1287_v59 }
 0x100   : > { %v1004_v14 = vpop.eup %1003  ;;  %v628_v16 = vmul.f32 0.70710677, %v1298_v7  ;;  %v667_v17 = vmul.f32 %v651_v6, %v603_v5  ;;  %v609_v3 = vmul.f32 0.5, %v1285_v58 }
 0x101   : > { %v1006_v19 = vpop.eup %1005  ;;  %v654_v20 = vadd.f32 1.0, %v1004_v14  ;;  %v684_v22 = vmul.f32 %v668_v10, %v374_v62  ;;  %v627_v23 = vmul.f32 0.70710677, %v1303_v11  ;;  %v935_v24 = vpop.f32.mrb[10].mxu1 }
 0x102   : > { %v653_v25 = vadd.f32 1.0, %v1006_v19  ;;  %1015 = verf.f32 %v628_v16  ;;  %v683_v26 = vmul.f32 %v667_v17, %v369_v4  ;;  %v1312_v27 = vadd.f32 %v935_v24, %v1257_v28  ;;  %v574_v29 = vpop.f32.mrb[11].mxu1  ;;  %v1314_v30 = vpop.f32.mrb[10].mxu0 }
 0x103   : > { %700 = vst [vmem:[%s1317_s16 + $0x8] sm:$0xff] %v684_v22  ;;  %1017 = verf.f32 %v627_v23  ;;  %v670_v31 = vmul.f32 %v654_v20, %v606_v15  ;;  %v1321_v32 = vadd.f32 %v1257_v28, %v574_v29  ;;  %v1324_v34 = vpop.f32.mrb[11].mxu0  ;;  %v612_v16 = vmul.f32 0.5, %v1298_v7 }
 0x104   : > { %v1008_v35 = vpop.eup %1007  ;;  %699 = vst [vmem:[%s1317_s16] sm:$0xff] %v683_v26  ;;  %v630_v37 = vmul.f32 0.70710677, %v1312_v27  ;;  %v669_v38 = vmul.f32 %v653_v25, %v605_v21  ;;  %v414_v19 = vadd.f32 %v1300_v9, %v1276_v54  ;;  %v409_v24 = vadd.f32 %v1276_v54, %v1306_v13 }
 0x105   : > { %v1010_v40 = vpop.eup %1009  ;;  %v656_v41 = vadd.f32 1.0, %v1008_v35  ;;  %v686_v43 = vmul.f32 %v670_v31, %v384_v12  ;;  %v629_v44 = vmul.f32 0.70710677, %v1321_v32  ;;  %v938_v45 = vpop.f32.mrb[12].mxu1  ;;  %v424_v13 = vadd.f32 %v1314_v30, %v1276_v54 }
 0x106   : > { %v655_v47 = vadd.f32 1.0, %v1010_v40  ;;  %1019 = verf.f32 %v630_v37  ;;  %v685_v46 = vmul.f32 %v669_v38, %v379_v18  ;;  %v1334_v48 = vadd.f32 %v938_v45, %v1257_v28  ;;  %v584_v51 = vpop.f32.mrb[13].mxu1  ;;  %v1336_v52 = vpop.f32.mrb[12].mxu0 }
 0x107   : > { %702 = vst [vmem:[%s1317_s16 + $0x18] sm:$0xff] %v686_v43  ;;  %1021 = verf.f32 %v629_v44  ;;  %v672_v50 = vmul.f32 %v656_v41, %v608_v36  ;;  %v1340_v53 = vadd.f32 %v1257_v28, %v584_v51  ;;  %v1344_v56 = vpop.f32.mrb[13].mxu0  ;;  %v434_v30 = vadd.f32 %v1336_v52, %v1276_v54 }
 0x108   : > { %v1012_v60 = vpop.eup %1011  ;;  %701 = vst [vmem:[%s1317_s16 + $0x10] sm:$0xff] %v685_v46  ;;  %v632_v62 = vmul.f32 0.70710677, %v1334_v48  ;;  %v671_v63 = vmul.f32 %v655_v47, %v607_v42  ;;  %v616_v43 = vmul.f32 0.5, %v1334_v48 }
 0x109   : > { %v1014_v1 = vpop.eup %1013  ;;  %v658_v2 = vadd.f32 1.0, %v1012_v60  ;;  %v688_v4 = vmul.f32 %v672_v50, %v394_v33  ;;  %v631_v57 = vmul.f32 0.70710677, %v1340_v53  ;;  %v941_v5 = vpop.f32.mrb[14].mxu1  ;;  %v614_v33 = vmul.f32 0.5, %v1312_v27 }
 0x10a   : > { %v657_v6 = vadd.f32 1.0, %v1014_v1  ;;  %1023 = verf.f32 %v632_v62  ;;  %v687_v55 = vmul.f32 %v671_v63, %v389_v39  ;;  %v600_v8 = vadd.f32 %v941_v5, %v1257_v28  ;;  %v594_v10 = vpop.f32.mrb[15].mxu1  ;;  %v909_v12 = vpop.f32.mrb[14].mxu0 }
 0x10b   : > { %704 = vst [vmem:[%s1317_s16 + $0x28] sm:$0xff] %v688_v4  ;;  %1025 = verf.f32 %v631_v57  ;;  %v674_v14 = vmul.f32 %v658_v2, %v610_v61  ;;  %v595_v59 = vadd.f32 %v1257_v28, %v594_v10  ;;  %v438_v15 = vpop.f32.mrb[15].mxu0  ;;  %v611_v28 = vmul.f32 0.5, %v1303_v11 }
 0x10c   : > { %v1016_v58 = vpop.eup %1015  ;;  %703 = vst [vmem:[%s1317_s16 + $0x20] sm:$0xff] %v687_v55  ;;  %v634_v17 = vmul.f32 0.70710677, %v600_v8  ;;  %v673_v18 = vmul.f32 %v657_v6, %v609_v3  ;;  %v613_v11 = vmul.f32 0.5, %v1321_v32  ;;  %v419_v39 = vadd.f32 %v1276_v54, %v1324_v34 }
 0x10d   : > { %v1018_v20 = vpop.eup %1017  ;;  %v660_v21 = vadd.f32 1.0, %v1016_v58  ;;  %v690_v22 = vmul.f32 %v674_v14, %v404_v49  ;;  %v633_v23 = vmul.f32 0.70710677, %v595_v59  ;;  %v615_v32 = vmul.f32 0.5, %v1340_v53 }
 0x10e   : > { %v659_v25 = vadd.f32 1.0, %v1018_v20  ;;  %1027 = verf.f32 %v634_v17  ;;  %v689_v26 = vmul.f32 %v673_v18, %v399_v0  ;;  %v429_v34 = vadd.f32 %v1276_v54, %v1344_v56 }
 0x10f   : > { %706 = vst [vmem:[%s1317_s16 + $0x38] sm:$0xff] %v690_v22  ;;  %1029 = verf.f32 %v633_v23  ;;  %v676_v7 = vmul.f32 %v660_v21, %v612_v16  ;;  %v618_v60 = vmul.f32 0.5, %v600_v8  ;;  %v444_v53 = vadd.f32 %v909_v12, %v1276_v54 }
 0x110   : > { %v1020_v29 = vpop.eup %1019  ;;  %705 = vst [vmem:[%s1317_s16 + $0x30] sm:$0xff] %v689_v26  ;;  %v675_v9 = vmul.f32 %v659_v25, %v611_v28  ;;  %v617_v62 = vmul.f32 0.5, %v595_v59  ;;  %v439_v0 = vadd.f32 %v1276_v54, %v438_v15 }
 0x111   : > { %v1022_v31 = vpop.eup %1021  ;;  %v662_v35 = vadd.f32 1.0, %v1020_v29  ;;  %v692_v36 = vmul.f32 %v676_v7, %v414_v19 }
 0x112   : > { %v661_v37 = vadd.f32 1.0, %v1022_v31  ;;  %v691_v38 = vmul.f32 %v675_v9, %v409_v24 }
 0x113   : > { %708 = vst [vmem:[%s1317_s16 + $0x48] sm:$0xff] %v692_v36  ;;  %v678_v40 = vmul.f32 %v662_v35, %v614_v33 }
 0x114   : > { %v1024_v41 = vpop.eup %1023  ;;  %707 = vst [vmem:[%s1317_s16 + $0x40] sm:$0xff] %v691_v38  ;;  %v677_v42 = vmul.f32 %v661_v37, %v613_v11 }
 0x115   : > { %v1026_v27 = vpop.eup %1025  ;;  %v664_v44 = vadd.f32 1.0, %v1024_v41  ;;  %v694_v45 = vmul.f32 %v678_v40, %v424_v13 }
 0x116   : > { %v663_v47 = vadd.f32 1.0, %v1026_v27  ;;  %v693_v46 = vmul.f32 %v677_v42, %v419_v39 }
 0x117   : > { %710 = vst [vmem:[%s1317_s16 + $0x58] sm:$0xff] %v694_v45  ;;  %v680_v51 = vmul.f32 %v664_v44, %v616_v43 }
 0x118   : > { %v1028_v50 = vpop.eup %1027  ;;  %709 = vst [vmem:[%s1317_s16 + $0x50] sm:$0xff] %v693_v46  ;;  %v679_v48 = vmul.f32 %v663_v47, %v615_v32 }
 0x119   : > { %v1030_v49 = vpop.eup %1029  ;;  %v666_v61 = vadd.f32 1.0, %v1028_v50  ;;  %v696_v52 = vmul.f32 %v680_v51, %v434_v30 }
 0x11a   : > { %v665_v63 = vadd.f32 1.0, %v1030_v49  ;;  %v695_v56 = vmul.f32 %v679_v48, %v429_v34 }
 0x11b   : > { %712 = vst [vmem:[%s1317_s16 + $0x68] sm:$0xff] %v696_v52  ;;  %v682_v1 = vmul.f32 %v666_v61, %v618_v60 }
 0x11c   : > { %711 = vst [vmem:[%s1317_s16 + $0x60] sm:$0xff] %v695_v56  ;;  %v681_v2 = vmul.f32 %v665_v63, %v617_v62 }
 0x11d   : > { %v698_v3 = vmul.f32 %v682_v1, %v444_v53 }
 0x11e   : > { %v697_v4 = vmul.f32 %v681_v2, %v439_v0 }
 0x11f   : > { %714 = vst [vmem:[%s1317_s16 + $0x78] sm:$0xff] %v698_v3 }
 0x120   : > { %713 = vst [vmem:[%s1317_s16 + $0x70] sm:$0xff] %v697_v4 }
 0x121   : > { %1044 = shalt.err (!%p1041_p3)
}
 0x122   : > { %s1045_s10 = scalar_lea.hbm %s1390_s30, 2048  ;;  %s1049_s13 = scalar_lea.hbm %s1444_s5, 4096 }
 0x123   : > { %p1046_p4 = scmp.ne.s32.totalorder %s1390_s30, %s1045_s10  ;;  %p1050_p9 = scmp.lt.u32.totalorder %s1390_s30, %s1444_s5 }
 0x124   : > { %p1051_p10 = scmp.lt.u32.totalorder %s1049_s13, %s1045_s10  ;;  %p1053_p12 = scmp.lt.u32.totalorder %s1045_s10, %s1390_s30 }
 0x125   : > { %p1047_p7 = pnand %p1046_p4, %p1166_p5 }
 0x126   : > { %p1052_p11 = por %p1051_p10, %p1050_p9 }
 0x127   : > { %p1048_p8 = pneg %p1047_p7 }
 0x128   : > { %p1054_p13 = por %p1053_p12, %p1052_p11 }
 0x12a   : > { %p1055_p0 = pnand %p1054_p13, %p1048_p8 }
 0x12c   : > { %1058 = shalt.err (!%p1055_p0)
}
 0x12d   : > { %s1096_s16 = smov 128   ;;  %s1097_s17 = smov 8  }
 0x12e   : > { %958 = dma.vmem_to_hbm [thread:$0]  (%p1166_p5), %s1392_s23, 2048, %s1390_s30, %s1398_s22, %s1096_s16, %s1096_s16, %s1097_s17  }
 0x12f PF: > { %p964_p1 = scmp.ge.s32.totalorder %s1093_s21, 2  ;;  %s744_s25 = sand.u32 1, %s1081_s18  }
 0x130   : > { %s745_s26 = scalar_lea.sflag [#allocation3], %s744_s25 }
 0x131   : > { %p961_p2 = pnand %p964_p1, %p1170_p6 }
 0x133   : > { %1076 = dma.done.wait (!%p961_p2), %s745_s26, 2048  }
 0x134   : > { %1078 = vsyncadd (!%p961_p2), %s745_s26, 4294965248  ;;  %p15_p3 = scmp.ge.s32.totalorder %s1153_s24, 4   ;;  %s1447_s18 = smov %s1085_s19 }
 0x135   : > { %s1448_s19 = smov %s1089_s20  ;;  %s1449_s20 = smov %s1164_s27 }
 0x136   : > { %s1450_s21 = smov %s1153_s24  ;;  %17 = sbr.rel (!%p15_p3) target bundleno = 3 (0x3), region = 75 }
 0x13d   :  { %750 = vsyncpa [#allocation3], 1 }
 0x13e   :  { %752 = vsyncpa [#allocation3 + $0x1], 1 }

</bundles_post_ra>
